<compile_context>
chip_gen: v7x
topology: tpu7x:2x2x1
jax: 0.10.0
libtpu: 0.0.40
codegen_flags: <defaults>
</compile_context>

<pallas_src>
import jax
import jax.numpy as jnp
from jax.experimental import pallas as pl
from jax.experimental.pallas import tpu as pltpu

LANE = 128      # vreg lane width
SUBLANE = 8     # vreg sublane count (f32)


def _round_up(x, m):
    return ((x + m - 1) // m) * m


def _mlp_kernel(x_ref, w1_ref, b1_ref, w2_ref, b2_ref, o_ref):
    # Fused hot path for one batch tile:
    #   (X @ W1 + b1) -> ReLU -> (@ W2 + b2)
    # Matmuls on the MXU (inputs in the parameter dtype so the bf16 path really
    # engages the bf16 MXU rate), f32 accumulation; bias-add / ReLU stay in f32
    # on the VPU (v5e has no bf16 VPU path).
    x = x_ref[...].astype(w1_ref.dtype)
    h = jnp.dot(x, w1_ref[...], preferred_element_type=jnp.float32)
    h = jnp.maximum(h + b1_ref[...], 0.0)
    y = jnp.dot(h.astype(w2_ref.dtype), w2_ref[...],
                preferred_element_type=jnp.float32)
    o_ref[...] = (y + b2_ref[...]).astype(o_ref.dtype)


def mlp_forward(x, w1, b1, w2, b2, out_features, *, tile_b=1024):
    """Pallas forward for Module.forward(X) == net(X).

    x:  (batch, in_features)
    w1: (in_features, hidden)        b1: (1, hidden)     [f32]
    w2: (hidden, out_cols)           b2: (1, out_cols)   [f32]
        where out_cols is either out_features (no padding) or a 128-multiple
        when the caller decided lane-padding is worth it.
    returns (batch, out_features)
    """
    batch, in_features = x.shape
    hidden = w1.shape[1]
    out_cols = w2.shape[1]
    itemsize = jnp.dtype(x.dtype).itemsize

    # ---- batch tile selection -------------------------------------------------
    # Big tiles amortize the ~0.35 us per-grid-step overhead, but keep >= 2
    # tiles whenever batch allows so the "parallel" batch axis can be sharded
    # across both v7x TensorCores.
    tb = _round_up(max(tile_b, SUBLANE), SUBLANE)
    half_batch = _round_up(pl.cdiv(batch, 2), SUBLANE)
    tb = min(tb, half_batch, _round_up(batch, SUBLANE))
    # Keep the double-buffered streamed tiles (x in, out out) well under VMEM.
    bytes_per_row = 2 * (in_features + out_cols) * itemsize  # x2 for double-buffering
    vmem_budget_rows = max(SUBLANE,
                           ((8 * 1024 * 1024) // max(bytes_per_row, 1))
                           // SUBLANE * SUBLANE)
    tb = max(SUBLANE, min(tb, vmem_budget_rows))
    grid = (pl.cdiv(batch, tb),)

    # ---- scheduler hint -------------------------------------------------------
    flops = 2 * batch * (in_features * hidden + hidden * out_cols)
    bytes_accessed = (batch * in_features * itemsize
                      + batch * out_cols * itemsize
                      + w1.size * jnp.dtype(w1.dtype).itemsize
                      + b1.size * jnp.dtype(b1.dtype).itemsize
                      + w2.size * jnp.dtype(w2.dtype).itemsize
                      + b2.size * jnp.dtype(b2.dtype).itemsize)
    cost = pl.CostEstimate(flops=flops, transcendentals=0,
                           bytes_accessed=bytes_accessed)

    out = pl.pallas_call(
        _mlp_kernel,
        out_shape=jax.ShapeDtypeStruct((batch, out_cols), x.dtype),
        grid_spec=pltpu.PrefetchScalarGridSpec(
            num_scalar_prefetch=0,
            grid=grid,
            in_specs=[
                # x: streamed per batch tile (auto double-buffered by Pallas)
                pl.BlockSpec((tb, in_features), lambda i: (i, 0)),
                # weights/biases: constant index_map -> VMEM-resident across steps
                pl.BlockSpec((in_features, hidden), lambda i: (0, 0)),
                pl.BlockSpec((1, hidden), lambda i: (0, 0)),
                pl.BlockSpec((hidden, out_cols), lambda i: (0, 0)),
                pl.BlockSpec((1, out_cols), lambda i: (0, 0)),
            ],
            out_specs=pl.BlockSpec((tb, out_cols), lambda i: (i, 0)),
        ),
        compiler_params=pltpu.CompilerParams(
            dimension_semantics=("parallel",),      # shards batch tiles on v7x
            vmem_limit_bytes=32 * 1024 * 1024),
        cost_estimate=cost,
    )(x, w1, b1, w2, b2)

    # Only slice when the caller chose lane-padding (large, near-multiple outs).
    if out_cols != out_features:
        out = out[:, :out_features]
    return out


class PallasModule:
    """Mirror of the d2l `Module` base class with a concrete MLP `net`.

    loss / plot / training_step / validation_step / configure_optimizers and
    the ProgressBoard are training-loop + plotting glue with no kernel
    equivalent; only forward() is implemented as a Pallas kernel.
    """

    def __init__(self, in_features=32, hidden=64, out_features=8, key=None,
                 param_dtype=jnp.float32):
        # TODO(synk): ProgressBoard / trainer hooks have no Pallas equivalent.
        key = jax.random.PRNGKey(0) if key is None else key
        k1, k2 = jax.random.split(key, 2)
        self.in_features = in_features
        self.hidden = hidden
        self.out_features = out_features

        # Logical (unpadded) parameters, Xavier-ish scaling.
        self.w1 = (jax.random.normal(k1, (in_features, hidden), jnp.float32)
                   * (1.0 / jnp.sqrt(in_features)))
        self.b1 = jnp.zeros((1, hidden), jnp.float32)
        self.w2 = (jax.random.normal(k2, (hidden, out_features), jnp.float32)
                   * (1.0 / jnp.sqrt(hidden)))
        self.b2 = jnp.zeros((1, out_features), jnp.float32)

        # Kernel-side parameters.  hidden is never padded (the intermediate h
        # lives entirely in vregs).  The output dim is padded to a 128 multiple
        # ONLY when the amplification is small (<=1.25x), i.e. when lane-dense
        # stores pay for themselves; otherwise the kernel writes the true width
        # (block last dim == full array dim, so it's legal).
        out_pad = _round_up(out_features, LANE)
        pad_out = (out_pad != out_features) and (out_pad <= 1.25 * out_features)
        out_cols = out_pad if pad_out else out_features

        self._w1k = self.w1.astype(param_dtype)
        self._b1k = self.b1                                   # f32 epilogue
        if pad_out:
            # Zero padding is exact: extra W2 columns produce zeros we slice off.
            self._w2k = (jnp.zeros((hidden, out_cols), param_dtype)
                         .at[:, :out_features].set(self.w2.astype(param_dtype)))
            self._b2k = (jnp.zeros((1, out_cols), jnp.float32)
                         .at[:, :out_features].set(self.b2))
        else:
            self._w2k = self.w2.astype(param_dtype)
            self._b2k = self.b2

    def forward(self, X):
        return mlp_forward(X, self._w1k, self._b1k, self._w2k, self._b2k,
                           self.out_features)

    __call__ = forward


def _reference_forward(x, w1, b1, w2, b2):
    h = jnp.maximum(x @ w1 + b1, 0.0)
    return h @ w2 + b2


if __name__ == "__main__":
    key = jax.random.PRNGKey(0)
    kx, kx2, kp = jax.random.split(key, 3)

    batch, in_features, hidden, out_features = 8, 32, 64, 8
    model = PallasModule(in_features, hidden, out_features, key=kp)

    # Small canonical shape: single batch tile.
    x = jax.random.normal(kx, (batch, in_features), jnp.float32)
    out = jax.block_until_ready(model(x))
    ref = _reference_forward(x, model.w1, model.b1, model.w2, model.b2)
    assert out.shape == (batch, out_features)
    assert jnp.allclose(out, ref, atol=2e-5, rtol=2e-5), "mismatch vs reference (small)"

    # Larger batch exercising the multi-tile (grid = 2) pipelined / megacore path.
    big_batch = 1024
    xb = jax.random.normal(kx2, (big_batch, in_features), jnp.float32)
    out_b = jax.block_until_ready(model(xb))
    ref_b = _reference_forward(xb, model.w1, model.b1, model.w2, model.b2)
    assert out_b.shape == (big_batch, out_features)
    assert jnp.allclose(out_b, ref_b, atol=2e-5, rtol=2e-5), "mismatch vs reference (tiled)"

    print("KERNEL_OK")
</pallas_src>

<mosaic_0001>
module attributes {stable_mosaic.version = 11 : i64} {
  func.func @_mlp_kernel(%arg0: i32, %arg1: memref<8x32xf32, #tpu.memory_space<vmem>>, %arg2: memref<32x64xf32, #tpu.memory_space<vmem>>, %arg3: memref<1x64xf32, #tpu.memory_space<vmem>>, %arg4: memref<64x8xf32, #tpu.memory_space<vmem>>, %arg5: memref<1x8xf32, #tpu.memory_space<vmem>>, %arg6: memref<8x8xf32, #tpu.memory_space<vmem>>) attributes {dimension_semantics = [#tpu.dimension_semantics<parallel>], iteration_bounds = array<i64: 1>, scalar_prefetch = 0 : i64, scratch_operands = 0 : i64, tpu.core_type = #tpu.core_type<tc>, window_params = [{transform_indices = @transform_0, window_bounds = array<i64: 8, 32>}, {pipeline_mode = #tpu.pipeline_mode<synchronous>, transform_indices = @transform_1, window_bounds = array<i64: 32, 64>}, {pipeline_mode = #tpu.pipeline_mode<synchronous>, transform_indices = @transform_2, window_bounds = array<i64: 1, 64>}, {pipeline_mode = #tpu.pipeline_mode<synchronous>, transform_indices = @transform_3, window_bounds = array<i64: 64, 8>}, {pipeline_mode = #tpu.pipeline_mode<synchronous>, transform_indices = @transform_4, window_bounds = array<i64: 1, 8>}, {transform_indices = @transform_5, window_bounds = array<i64: 8, 8>}]} {
    %c0 = arith.constant 0 : index
    %c0_0 = arith.constant 0 : index
    %0 = vector.load %arg1[%c0, %c0_0] : memref<8x32xf32, #tpu.memory_space<vmem>>, vector<8x32xf32>
    %c0_1 = arith.constant 0 : index
    %c0_2 = arith.constant 0 : index
    %1 = vector.load %arg2[%c0_1, %c0_2] : memref<32x64xf32, #tpu.memory_space<vmem>>, vector<32x64xf32>
    %cst = arith.constant dense<0.000000e+00> : vector<8x64xf32>
    %2 = tpu.matmul %0, %1, %cst {dimension_numbers = #tpu.dot_dimension_numbers<[1], [0], [0], [1], [0, 0, 1, 1], [], []>} : vector<8x32xf32>, vector<32x64xf32>, vector<8x64xf32> -> vector<8x64xf32>
    %c0_3 = arith.constant 0 : index
    %c0_4 = arith.constant 0 : index
    %3 = vector.load %arg3[%c0_3, %c0_4] : memref<1x64xf32, #tpu.memory_space<vmem>>, vector<1x64xf32>
    %4 = vector.broadcast %3 : vector<1x64xf32> to vector<8x64xf32>
    %5 = arith.addf %2, %4 : vector<8x64xf32>
    %cst_5 = arith.constant 0.000000e+00 : f32
    %6 = vector.broadcast %cst_5 : f32 to vector<8x64xf32>
    %7 = arith.maximumf %5, %6 : vector<8x64xf32>
    %c0_6 = arith.constant 0 : index
    %c0_7 = arith.constant 0 : index
    %8 = vector.load %arg4[%c0_6, %c0_7] : memref<64x8xf32, #tpu.memory_space<vmem>>, vector<64x8xf32>
    %cst_8 = arith.constant dense<0.000000e+00> : vector<8x8xf32>
    %9 = tpu.matmul %7, %8, %cst_8 {dimension_numbers = #tpu.dot_dimension_numbers<[1], [0], [0], [1], [0, 0, 1, 1], [], []>} : vector<8x64xf32>, vector<64x8xf32>, vector<8x8xf32> -> vector<8x8xf32>
    %c0_9 = arith.constant 0 : index
    %c0_10 = arith.constant 0 : index
    %10 = vector.load %arg5[%c0_9, %c0_10] : memref<1x8xf32, #tpu.memory_space<vmem>>, vector<1x8xf32>
    %11 = vector.broadcast %10 : vector<1x8xf32> to vector<8x8xf32>
    %12 = arith.addf %9, %11 : vector<8x8xf32>
    %c0_11 = arith.constant 0 : index
    %c0_12 = arith.constant 0 : index
    %13 = vector.load %arg6[%c0_11, %c0_12] : memref<8x8xf32, #tpu.memory_space<vmem>>, vector<8x8xf32>
    tpu.vector_store %arg6[%c0_11, %c0_12], %12 {strides = array<i32>} : memref<8x8xf32, #tpu.memory_space<vmem>>, vector<8x8xf32>,
    return
  }
  func.func @transform_0(%arg0: i32) -> (i32, i32) {
    %c0_i32 = arith.constant 0 : i32
    %c0_i32_0 = arith.constant 0 : i32
    return %arg0, %c0_i32 : i32, i32
  }
  func.func @transform_1(%arg0: i32) -> (i32, i32) {
    %c0_i32 = arith.constant 0 : i32
    %c0_i32_0 = arith.constant 0 : i32
    %c0_i32_1 = arith.constant 0 : i32
    return %c0_i32, %c0_i32_0 : i32, i32
  }
  func.func @transform_2(%arg0: i32) -> (i32, i32) {
    %c0_i32 = arith.constant 0 : i32
    %c0_i32_0 = arith.constant 0 : i32
    %c0_i32_1 = arith.constant 0 : i32
    return %c0_i32, %c0_i32_0 : i32, i32
  }
  func.func @transform_3(%arg0: i32) -> (i32, i32) {
    %c0_i32 = arith.constant 0 : i32
    %c0_i32_0 = arith.constant 0 : i32
    %c0_i32_1 = arith.constant 0 : i32
    return %c0_i32, %c0_i32_0 : i32, i32
  }
  func.func @transform_4(%arg0: i32) -> (i32, i32) {
    %c0_i32 = arith.constant 0 : i32
    %c0_i32_0 = arith.constant 0 : i32
    %c0_i32_1 = arith.constant 0 : i32
    return %c0_i32, %c0_i32_0 : i32, i32
  }
  func.func @transform_5(%arg0: i32) -> (i32, i32) {
    %c0_i32 = arith.constant 0 : i32
    %c0_i32_0 = arith.constant 0 : i32
    return %arg0, %c0_i32 : i32, i32
  }
}

</mosaic_0001>

<bundles_post_ra>
// kernel: tpu_custom_call.1
= control target key start
LH: loop header
LB: loop body
LE: loop exit
PB: predicated region body
PF: predicated region fallthrough
CT: control target
= control target key end

     0   :  { %v307_v3 = vmov 0.0|0.0   ;;  %vm308_vm0 = vmmov 0   ;;  %v309_v6 = vmov 0.0   ;;  %s398_s0 = inlined_call_operand.vmem [shape: f32[8,32], index: 0, kind: input, shape index: {}]   ;;  %s399_s1 = inlined_call_operand.vmem [shape: f32[32,64], index: 1, kind: input, shape index: {}]   ;;  %s400_s2 = inlined_call_operand.vmem [shape: f32[1,64], index: 2, kind: input, shape index: {}]   ;;  %s401_s3 = inlined_call_operand.vmem [shape: f32[64,8], index: 3, kind: input, shape index: {}]   ;;  %s402_s4 = inlined_call_operand.vmem [shape: f32[1,8], index: 4, kind: input, shape index: {}]   ;;  %s403_s5 = inlined_call_operand.hbm [shape: f32[8,8], index: 5, kind: output, shape index: {}]  }
   0x1   :  { %v22_v0 = vld [vmem:[%s399_s1] sm:$0xff]  ;;  %v23_v1 = vld [vmem:[%s399_s1 + $0x8] sm:$0xff]  ;;  %v24_v2 = vld [vmem:[%s399_s1 + $0x10] sm:$0xff]  ;;  %261 = vmatprep.subr.bf16.mxu0 %v307_v3  ;;  %239 = vmatprep.mubr.msk.f32.mxu0 %vm308_vm0, %v309_v6 }
   0x2   :  { %v262_v4 = vpack.c.bf16 %v23_v1, %v22_v0  ;;  %v25_v5 = vld [vmem:[%s399_s1 + $0x18] sm:$0xff]  ;;  %v108_v7 = vld [vmem:[%s401_s3] sm:$0xff]  ;;  %267 = vmatprep.subr.bf16.mxu1 %v307_v3  ;;  %v109_v8 = vld [vmem:[%s401_s3 + $0x8] sm:$0xff]  ;;  %258 = vmatprep.mubr.msk.f32.mxu1 %vm308_vm0, %v309_v6 }
   0x3   :  { %v110_v9 = vld [vmem:[%s401_s3 + $0x10] sm:$0xff]  ;;  %v111_v10 = vld [vmem:[%s401_s3 + $0x18] sm:$0xff]  ;;  %v265_v11 = vpack.c.bf16 %v25_v5, %v24_v2  ;;  %v268_v12 = vpack.c.bf16 %v109_v8, %v108_v7 }
   0x4   :  { %263 = vmatpush3.bf16.msra.mxu0 %v262_v4 }
   0x5   :  { %264 = vmatprep.subr.bf16.mxu0 %v307_v3 }
   0x6   :  { %10 = vsyncpa [#allocation3], 0  ;;  %269 = vmatpush3.bf16.msra.mxu1 %v268_v12  ;;  %v271_v13 = vpack.c.bf16 %v111_v10, %v110_v9  ;;  %v112_v14 = vld [vmem:[%s401_s3 + $0x20] sm:$0xff]  ;;  %v113_v15 = vld [vmem:[%s401_s3 + $0x28] sm:$0xff]  ;;  %vm33_vm1 = vcmask 261120   ;;  %vm123_vm2 = vcmask 523264  }
   0x7   :  { %270 = vmatprep.subr.bf16.mxu1 %v307_v3  ;;  %v21_v16 = vld [vmem:[%s398_s0] sm:$0xff]  ;;  %v274_v17 = vpack.c.bf16 %v113_v15, %v112_v14  ;;  %v114_v18 = vld [vmem:[%s401_s3 + $0x30] sm:$0xff]  ;;  %v115_v19 = vld [vmem:[%s401_s3 + $0x38] sm:$0xff]  ;;  %s310_s21 = smov [#allocation2]   ;;  %vm197_vm3 = vcmask 64512  }
   0x8   :  { %266 = vmatpush3.bf16.msra.mxu0 %v265_v11  ;;  %v277_v20 = vpack.c.bf16 %v115_v19, %v114_v18  ;;  %v213_v21 = vld [vmem:[%s400_s2] ss:$0 sm:$0xff]  ;;  %s205_s22 = sshll.u32 %s310_s21, 4  ;;  %s206_s22 = int_to_ptr.vmem [resolvable:$true] %s205_s22 }
   0x9   :  { %v215_v26 = vld [vmem:[%s402_s4] ss:$0 sm:$0xff]  ;;  %s283_s3 = scalar_lea.vmem %s206_s22, 128  ;;  %p288_p1 = scmp.lt.s32.totalorder %s206_s22, %s206_s22 }
   0xa   :  { %272 = vmatpush3.bf16.msra.mxu1 %v271_v13  ;;  %p284_p0 = scmp.ne.s32.totalorder %s206_s22, %s283_s3  ;;  %p289_p2 = scmp.lt.s32.totalorder %s283_s3, %s283_s3 }
   0xb   :  { %240 = vmatmul.mubr.msk.f32.vlgmr.msra.gmra.mrb[0].mxu0 %vm33_vm1, %v21_v16  ;;  %273 = vmatprep.subr.bf16.mxu1 %v307_v3 }
   0xc   :  { %p290_p3 = por %p289_p2, %p288_p1 }
   0xe   :  { %275 = vmatpush3.bf16.msra.mxu1 %v274_v17  ;;  %p291_p4 = pnand %p290_p3, %p284_p0 }
   0xf   :  { %276 = vmatprep.subr.bf16.mxu1 %v307_v3 }
  0x12   :  { %278 = vmatpush3.bf16.msra.mxu1 %v277_v20 }
  0xde   :  { %v103_v22 = vpop.f32.mrb[0].mxu0 }
  0xdf   :  { %v104_v23 = vadd.f32 %v213_v21, %v103_v22  ;;  %v241_v24 = vpop.f32.mrb[1].mxu0 }
  0xe1   :  { %v107_v25 = vmax.f32 %v104_v23, 0.0 }
  0xe3   :  { %259 = vmatmul.mubr.msk.f32.vlgmr.msra.gmra.mrb[0].mxu1 %vm123_vm2, %v107_v25 }
 0x1b6   :  { %v193_v27 = vpop.f32.mrb[0].mxu1 }
 0x1b7   :  { %v194_v28 = vadd.f32 %v215_v26, %v193_v27  ;;  %v260_v29 = vpop.f32.mrb[1].mxu1 }
 0x1b9   :  { %198 = vst.msk [vmem:[#allocation2] sm:$0xff] %vm197_vm3, %v194_v28 }
 0x1ba   :  { %294 = shalt.err (!%p291_p4)
}
 0x1bb   :  { %s295_s24 = scalar_lea.hbm %s403_s5, 128 }
 0x1bc   :  { %p296_p5 = scmp.ne.s32.totalorder %s403_s5, %s295_s24  ;;  %p299_p6 = scmp.lt.u32.totalorder %s295_s24, %s403_s5 }
 0x1be   :  { %p301_p7 = pnand %p299_p6, %p296_p5 }
 0x1c0   :  { %304 = shalt.err (!%p301_p7)
}
 0x1c1   :  { %208 = dma.vmem_to_hbm [thread:$0]  %s206_s22, 128, %s403_s5, [#allocation3]  }
 0x1c2   :  { %305 = dma.done.wait [#allocation3], 128  }
 0x1c3   :  { %306 = vsyncadd [#allocation3], 4294967168 }
 0x1c4   :  { %212 = vsyncpa [#allocation3], 1 }

</bundles_post_ra>
